<compile_context>
chip_gen: v7x
topology: tpu7x:2x2x1
jax: 0.10.0
libtpu: 0.0.40
codegen_flags: <defaults>
</compile_context>

<pallas_src>
import jax
import jax.numpy as jnp
from jax.experimental import pallas as pl
from jax.experimental.pallas import tpu as pltpu

F32 = jnp.float32
BF16 = jnp.bfloat16
_LANE = 128


# ----------------------------------------------------------- VMEM budgeting --
def _vmem_limit_bytes():
    """Scoped VMEM limit: 3/4 of physical (96 MiB v5e/v6e, 48 MiB v7x)."""
    cap = 64 * 1024 * 1024  # conservative default (v7x per-TensorCore VMEM)
    try:
        cap = int(pltpu.get_tpu_info().vmem_capacity_bytes)
    except Exception:
        pass
    return (cap * 3) // 4


def _fused_fits(C, Np, elem_bytes, budget):
    """Conservative VMEM footprint of the fused one-pass kernel."""
    need = 4 * C * Np * elem_bytes      # double-buffered input + output slabs
    need += C * Np * (4 + 2)            # f32 att@x intermediate + bf16 x copy
    need += 4 * C * C * 4               # energy / exp / attention working tiles
    return need <= budget


def _pick_tile_n(C, Np, elem_bytes, budget, max_tile_n=None):
    """Largest lane-dense N tile whose apply-kernel footprint fits the budget:
    2x input tile + 2x output tile (double-buffered) + attention + f32 result."""
    fixed = 4 * C * C * 4
    per_lane = C * (4 * elem_bytes + 4)
    avail = max(budget - fixed, per_lane * _LANE)
    tn = (avail // per_lane) // _LANE * _LANE
    tn = int(min(Np, tn, 4096))
    if max_tile_n is not None:
        tn = min(tn, int(max_tile_n))
    tn = max(tn, _LANE)
    while Np % tn:                       # Np is a multiple of 128, so this ends
        tn -= _LANE
    return tn


# ------------------------------------------------------ fused one-pass path --
def _cam_fused_kernel(gamma_ref, x_ref, o_ref):
    x = x_ref[0]                                                 # (C, Np)
    xb = x.astype(BF16)
    # E[i, j] = sum_n x[i, n] * x[j, n]  (bf16 MXU operands, f32 accumulation)
    energy = jax.lax.dot_general(
        xb, xb, (((1,), (1,)), ((), ())), preferred_element_type=F32)
    # softmax(rowmax(E) - E) == softmax(-E); stabilize with rowmin(E).
    e = jnp.exp(jnp.min(energy, axis=-1, keepdims=True) - energy)
    att = e * pl.reciprocal(jnp.sum(e, axis=-1, keepdims=True), approx=True)
    out = jnp.dot(att.astype(BF16), xb, preferred_element_type=F32)   # (C, Np)
    g = gamma_ref[0]                                             # SMEM scalar
    o_ref[0] = (g * out + x.astype(F32)).astype(o_ref.dtype)


def _cam_fused(x_flat, gamma, vmem_limit):
    B, C, Np = x_flat.shape
    return pl.pallas_call(
        _cam_fused_kernel,
        out_shape=jax.ShapeDtypeStruct((B, C, Np), x_flat.dtype),
        grid=(B,),
        in_specs=[
            pl.BlockSpec(memory_space=pltpu.MemorySpace.SMEM),   # gamma (1,)
            pl.BlockSpec((1, C, Np), lambda b: (b, 0, 0)),
        ],
        out_specs=pl.BlockSpec((1, C, Np), lambda b: (b, 0, 0)),
        compiler_params=pltpu.CompilerParams(
            dimension_semantics=("parallel",),
            vmem_limit_bytes=vmem_limit),
    )(gamma, x_flat)


# -------------------------------------- two-pass path, kernel 1: attention ---
def _cam_attention_kernel(x_ref, att_ref):
    nt = pl.program_id(1)

    @pl.when(nt == 0)
    def _():
        att_ref[...] = jnp.zeros_like(att_ref)

    xb = x_ref[0].astype(BF16)                                   # (C, tn)
    # Accumulate the Gram matrix directly in the resident f32 output block
    # (block index constant over the N axis -> no separate VMEM scratch).
    att_ref[0] += jax.lax.dot_general(
        xb, xb, (((1,), (1,)), ((), ())), preferred_element_type=F32)

    @pl.when(nt == pl.num_programs(1) - 1)
    def _():
        energy = att_ref[0]                                      # (C, C)
        e = jnp.exp(jnp.min(energy, axis=-1, keepdims=True) - energy)
        att_ref[0] = e * pl.reciprocal(jnp.sum(e, axis=-1, keepdims=True),
                                       approx=True)


def _cam_attention(x_flat, tn, vmem_limit):
    # NOTE: on v7x with B == 1 the only parallel axis here has extent 1 (one
    # TensorCore idles); splitting C across two row blocks would recover it.
    B, C, Np = x_flat.shape
    return pl.pallas_call(
        _cam_attention_kernel,
        out_shape=jax.ShapeDtypeStruct((B, C, C), F32),
        grid=(B, Np // tn),
        in_specs=[pl.BlockSpec((1, C, tn), lambda b, n: (b, 0, n))],
        out_specs=pl.BlockSpec((1, C, C), lambda b, n: (b, 0, 0)),
        compiler_params=pltpu.CompilerParams(
            dimension_semantics=("parallel", "arbitrary"),
            vmem_limit_bytes=vmem_limit),
    )(x_flat)


# ------------------------------------------ two-pass path, kernel 2: apply ---
def _cam_apply_kernel(gamma_ref, att_ref, x_ref, o_ref):
    g = gamma_ref[0]                                             # SMEM scalar
    att = att_ref[0].astype(BF16)                                # (C, C)
    x = x_ref[0]                                                 # (C, tn)
    out = jnp.dot(att, x.astype(BF16), preferred_element_type=F32)
    o_ref[0] = (g * out + x.astype(F32)).astype(o_ref.dtype)


def _cam_apply(x_flat, att, gamma, tn, vmem_limit):
    B, C, Np = x_flat.shape
    return pl.pallas_call(
        _cam_apply_kernel,
        out_shape=jax.ShapeDtypeStruct((B, C, Np), x_flat.dtype),
        grid=(B, Np // tn),
        in_specs=[
            pl.BlockSpec(memory_space=pltpu.MemorySpace.SMEM),   # gamma (1,)
            pl.BlockSpec((1, C, C), lambda b, n: (b, 0, 0)),
            pl.BlockSpec((1, C, tn), lambda b, n: (b, 0, n)),
        ],
        out_specs=pl.BlockSpec((1, C, tn), lambda b, n: (b, 0, n)),
        compiler_params=pltpu.CompilerParams(
            dimension_semantics=("parallel", "parallel"),
            vmem_limit_bytes=vmem_limit),
    )(gamma, att, x_flat)


# ----------------------------------------------------------------- wrapper ---
def cam_unit(x_nchw, gamma, *, force_two_pass=False, max_tile_n=None):
    """CAM_Unit.forward for NCHW input x and scalar gamma (shape (1,))."""
    assert gamma.shape == (1,), "CAM_Unit gamma is a single learnable scalar"
    B, C, H, W = x_nchw.shape
    N = H * W
    Np = ((N + _LANE - 1) // _LANE) * _LANE
    x_flat = x_nchw.reshape(B, C, N)
    if Np != N:
        # Zero columns contribute exactly 0 to the Gram matrix and to att @ x;
        # the padded tail is sliced off below, so numerics are unchanged.
        x_flat = jnp.pad(x_flat, ((0, 0), (0, 0), (0, Np - N)))

    vmem_limit = _vmem_limit_bytes()
    budget = vmem_limit - 2 * 1024 * 1024            # headroom for compiler scratch
    elem_bytes = jnp.dtype(x_flat.dtype).itemsize

    if not force_two_pass and _fused_fits(C, Np, elem_bytes, budget):
        out_flat = _cam_fused(x_flat, gamma, vmem_limit)
    else:
        tn = _pick_tile_n(C, Np, elem_bytes, budget, max_tile_n)
        att = _cam_attention(x_flat, tn, vmem_limit)             # (B, C, C) f32
        out_flat = _cam_apply(x_flat, att, gamma, tn, vmem_limit)

    if Np != N:
        out_flat = out_flat[:, :, :N]
    return out_flat.reshape(B, C, H, W)


# -------------------------------------------------------- reference & main ---
def _cam_unit_reference(x_nchw, gamma):
    """Pure-JAX reference with the kernels' precision choices (bf16 MXU operands,
    f32 accumulation).  Matches the PyTorch forward because
    softmax(rowmax(E) - E) == softmax(-E)."""
    B, C, H, W = x_nchw.shape
    xf = x_nchw.reshape(B, C, H * W)
    xb = xf.astype(BF16)
    energy = jnp.einsum("bcn,bdn->bcd", xb, xb, preferred_element_type=F32)
    e = jnp.exp(jnp.min(energy, axis=-1, keepdims=True) - energy)
    att = e / jnp.sum(e, axis=-1, keepdims=True)
    out = jnp.einsum("bcd,bdn->bcn", att.astype(BF16), xb,
                     preferred_element_type=F32)
    out = gamma[0] * out + xf
    return out.reshape(B, C, H, W)


if __name__ == "__main__":
    # PyTorch initialises gamma = 0 (output would equal the input exactly);
    # use a nonzero value so the attention path is numerically exercised.
    gamma = jnp.full((1,), 0.5, F32)

    # 1) Fused single-pass fast path (N divisible by 128, slab fits VMEM).
    x1 = jax.random.normal(jax.random.PRNGKey(0), (2, 64, 16, 16), F32)
    y1 = jax.block_until_ready(cam_unit(x1, gamma))
    assert y1.shape == x1.shape
    assert bool(jnp.all(jnp.isfinite(y1)))
    assert bool(jnp.allclose(y1, _cam_unit_reference(x1, gamma),
                             atol=5e-2, rtol=5e-2))

    # 2) Two-pass path: N padding (24*24 = 576 -> 640) and a small tile so the
    #    Gram-matrix accumulation runs across several grid steps.
    x2 = jax.random.normal(jax.random.PRNGKey(1), (1, 64, 24, 24), F32)
    y2 = jax.block_until_ready(
        cam_unit(x2, gamma, force_two_pass=True, max_tile_n=128))
    assert y2.shape == x2.shape
    assert bool(jnp.all(jnp.isfinite(y2)))
    assert bool(jnp.allclose(y2, _cam_unit_reference(x2, gamma),
                             atol=5e-2, rtol=5e-2))

    print("KERNEL_OK")
</pallas_src>

<mosaic_0001>
module attributes {stable_mosaic.version = 11 : i64} {
  func.func @_cam_fused_kernel(%arg0: i32, %arg1: memref<1xf32, #tpu.memory_space<smem>>, %arg2: memref<1x64x256xf32, #tpu.memory_space<vmem>>, %arg3: memref<1x64x256xf32, #tpu.memory_space<vmem>>) attributes {dimension_semantics = [#tpu.dimension_semantics<parallel>], iteration_bounds = array<i64: 2>, scalar_prefetch = 0 : i64, scratch_operands = 0 : i64, tpu.core_type = #tpu.core_type<tc>, window_params = [{transform_indices = @transform_0, window_bounds = array<i64: 1>}, {transform_indices = @transform_1, window_bounds = array<i64: 1, 64, 256>}, {transform_indices = @transform_2, window_bounds = array<i64: 1, 64, 256>}]} {
    %c0 = arith.constant 0 : index
    %c0_0 = arith.constant 0 : index
    %c0_1 = arith.constant 0 : index
    %0 = vector.load %arg2[%c0, %c0_0, %c0_1] : memref<1x64x256xf32, #tpu.memory_space<vmem>>, vector<1x64x256xf32>
    %1 = vector.shape_cast %0 : vector<1x64x256xf32> to vector<64x256xf32>
    %2 = arith.truncf %1 : vector<64x256xf32> to vector<64x256xbf16>
    %cst = arith.constant dense<0.000000e+00> : vector<64x64xf32>
    %3 = tpu.matmul %2, %2, %cst {dimension_numbers = #tpu.dot_dimension_numbers<[1], [1], [0], [0], [0, 0, 1, 0], [], []>} : vector<64x256xbf16>, vector<64x256xbf16>, vector<64x64xf32> -> vector<64x64xf32>
    %cst_2 = arith.constant dense<0x7F800000> : vector<64xf32>
    %4 = vector.multi_reduction <minimumf>, %3, %cst_2 [1] : vector<64x64xf32> to vector<64xf32>
    %5 = vector.shape_cast %4 : vector<64xf32> to vector<64x1xf32>
    %6 = vector.broadcast %5 : vector<64x1xf32> to vector<64x64xf32>
    %7 = arith.subf %6, %3 : vector<64x64xf32>
    %8 = math.exp %7 : vector<64x64xf32>
    %cst_3 = arith.constant dense<0.000000e+00> : vector<64xf32>
    %9 = vector.multi_reduction <add>, %8, %cst_3 [1] : vector<64x64xf32> to vector<64xf32>
    %10 = vector.shape_cast %9 : vector<64xf32> to vector<64x1xf32>
    %11 = tpu.reciprocal %10 {approx = true} : vector<64x1xf32> -> vector<64x1xf32>
    %12 = vector.broadcast %11 : vector<64x1xf32> to vector<64x64xf32>
    %13 = arith.mulf %8, %12 : vector<64x64xf32>
    %14 = arith.truncf %13 : vector<64x64xf32> to vector<64x64xbf16>
    %cst_4 = arith.constant dense<0.000000e+00> : vector<64x256xf32>
    %15 = tpu.matmul %14, %2, %cst_4 {dimension_numbers = #tpu.dot_dimension_numbers<[1], [0], [0], [1], [0, 0, 1, 1], [], []>} : vector<64x64xbf16>, vector<64x256xbf16>, vector<64x256xf32> -> vector<64x256xf32>
    %c0_5 = arith.constant 0 : index
    %16 = memref.load %arg1[%c0_5] : memref<1xf32, #tpu.memory_space<smem>>
    %17 = vector.broadcast %16 : f32 to vector<64x256xf32>
    %18 = arith.mulf %17, %15 : vector<64x256xf32>
    %19 = arith.addf %18, %1 : vector<64x256xf32>
    %c0_6 = arith.constant 0 : index
    %c0_7 = arith.constant 0 : index
    %c0_8 = arith.constant 0 : index
    %20 = vector.load %arg3[%c0_6, %c0_7, %c0_8] : memref<1x64x256xf32, #tpu.memory_space<vmem>>, vector<1x64x256xf32>
    %21 = vector.shape_cast %20 : vector<1x64x256xf32> to vector<64x256xf32>
    %22 = vector.shape_cast %19 : vector<64x256xf32> to vector<1x64x256xf32>
    tpu.vector_store %arg3[%c0_6, %c0_7, %c0_8], %22 {strides = array<i32>} : memref<1x64x256xf32, #tpu.memory_space<vmem>>, vector<1x64x256xf32>,
    return
  }
  func.func @transform_0(%arg0: i32) -> i32 {
    %c0_i32 = arith.constant 0 : i32
    %c0_i32_0 = arith.constant 0 : i32
    return %c0_i32 : i32
  }
  func.func @transform_1(%arg0: i32) -> (i32, i32, i32) {
    %c0_i32 = arith.constant 0 : i32
    %c0_i32_0 = arith.constant 0 : i32
    %c0_i32_1 = arith.constant 0 : i32
    return %arg0, %c0_i32, %c0_i32_0 : i32, i32, i32
  }
  func.func @transform_2(%arg0: i32) -> (i32, i32, i32) {
    %c0_i32 = arith.constant 0 : i32
    %c0_i32_0 = arith.constant 0 : i32
    %c0_i32_1 = arith.constant 0 : i32
    return %arg0, %c0_i32, %c0_i32_0 : i32, i32, i32
  }
}

</mosaic_0001>

<bundles_post_ra>
// kernel: tpu_custom_call.1
= control target key start
LH: loop header
LB: loop body
LE: loop exit
PB: predicated region body
PF: predicated region fallthrough
CT: control target
= control target key end

     0   :  { %s1081_s0 = inlined_call_operand.<no memory space> [shape: f32[1], index: 0, kind: input, shape index: {}]   ;;  %s1082_s1 = inlined_call_operand.hbm [shape: f32[2,64,256], index: 1, kind: input, shape index: {}]   ;;  %s1083_s2 = inlined_call_operand.hbm [shape: f32[2,64,256], index: 2, kind: output, shape index: {}]  }
   0x1   :  { %7 = sst [smem:[#allocation2]] %s1081_s0 }
   0x2   :  { %8 = vsyncpa [#allocation4], 0 }
   0x3   :  { %10 = vsyncpa [#allocation4 + $0x1], 0 }
   0x4   :  { %11 = vsyncpa [#allocation5], 0 }
   0x5   :  { %13 = vsyncpa [#allocation5 + $0x1], 0  ;;  %s794_s11 = smov 0   ;;  %s796_s12 = smov 0  }
   0x6   :  { %s798_s13 = smov 0   ;;  %s800_s14 = smov 0  }
   0x7 LB: > { %s815_s0 = sadd.s32 4294967295, %s767_s14   ;;  %s568_s15 = sadd.s32 4294967294, %s767_s14   ;;  %s767_s14 = sphi %s800_s14, %s1096_s14   ;;  %s763_s13 = sphi %s798_s13, %s1095_s13   ;;  %s759_s12 = sphi %s796_s12, %s1094_s12   ;;  %s755_s11 = sphi %s794_s11, %s1093_s11  }
   0x8   : > { %s819_s16 = sadd.s32 1, %s767_s14   ;;  %s47_s17 = sadd.s32 1, %s763_s13 }
   0x9   : > { %s44_s18 = ssub.s32 %s767_s14, %s819_s16  ;;  %p54_p0 = scmp.ne.s32.totalorder %s763_s13, %s759_s12 }
   0xa   : > { %p45_p1 = scmp.eq.s32.totalorder %s44_s18, 0  ;;  %p55_p2 = scmp.eq.s32.totalorder %s767_s14, 0 }
   0xb   : > { %p60_p3 = scmp.ne.s32.totalorder %s759_s12, %s755_s11  ;;  %p61_p4 = scmp.eq.s32.totalorder %s815_s0, 0 }
   0xc   : > { %s831_s19 = scalar_select %p45_p1, %s763_s13, %s47_s17  }
   0xd   : > { %p833_p5 = por %p55_p2, %p54_p0  ;;  %p837_p6 = por %p61_p4, %p60_p3 }
   0xe   : > { %p84_p7 = scmp.eq.s32.totalorder %s815_s0, 1  ;;  %p90_p8 = scmp.eq.s32.totalorder %s568_s15, 1 }
   0xf   : > { %p600_p10 = scmp.lt.s32.totalorder %s767_s14, 2  ;;  %s113_s24 = sand.u32 1, %s763_s13  }
  0x10   : > { %p844_p11 = por %p84_p7, %p54_p0  ;;  %p848_p12 = por %p90_p8, %p60_p3 }
  0x11   : > { %s586_s25 = sshll.u32 %s767_s14, 11  ;;  %s571_s26 = sshll.u32 %s113_s24, 7 }
  0x12   : > { %s1087_s22 = scalar_select %p844_p11, 1, 0 }
  0x13   : > { %s1088_s23 = scalar_select %p848_p12, 1, 0 }
  0x14   : > { %s857_s29 = scalar_lea.hbm %s1082_s1, %s586_s25  ;;  %s117_s30 = scalar_lea.vmem [#allocation3], %s571_s26 }
  0x15   : > { %s124_s3 = sshll.u32 %s117_s30, 4  ;;  %p861_p13 = pnand %p600_p10, %p833_p5  ;;  %s865_s3 = int_to_ptr.vmem [resolvable:$true] %s124_s3 }
  0x16   : > { %s867_s5 = scalar_lea.sflag [#allocation4], %s113_s24  ;;  %s671_s6 = scalar_lea.hbm %s857_s29, 2048 }
  0x17   : > { %p672_p0 = scmp.ne.s32.totalorder %s857_s29, %s671_s6  ;;  %p673_p1 = pneg %p861_p13 }
  0x18   : > { %s676_s9 = scalar_lea.hbm %s1082_s1, 4096  ;;  %p677_p4 = scmp.lt.u32.totalorder %s857_s29, %s1082_s1 }
  0x19   : > { %p674_p2 = pnand %p673_p1, %p672_p0  ;;  %p678_p5 = scmp.lt.u32.totalorder %s676_s9, %s671_s6 }
  0x1a   : > { %p680_p8 = scmp.lt.u32.totalorder %s671_s6, %s857_s29 }
  0x1b   : > { %p675_p3 = pneg %p674_p2  ;;  %p679_p7 = por %p678_p5, %p677_p4 }
  0x1d   : > { %p681_p10 = por %p680_p8, %p679_p7 }
  0x1f   : > { %p682_p9 = pnand %p681_p10, %p675_p3 }
  0x21   : > { %685 = shalt.err (!%p682_p9)
}
  0x22   : > { %s686_s17 = scalar_lea.vmem %s865_s3, 2048  ;;  %s769_s18 = smov [#allocation3]  }
  0x23   : > { %p687_p0 = scmp.ne.s32.totalorder %s865_s3, %s686_s17  ;;  %s691_s20 = sshll.u32 %s769_s18, 4  ;;  %s692_s20 = int_to_ptr.vmem [resolvable:$false] %s691_s20 }
  0x24   : > { %s693_s24 = scalar_lea.vmem %s692_s20, 4096  ;;  %p694_p11 = scmp.lt.s32.totalorder %s865_s3, %s692_s20 }
  0x25   : > { %p689_p2 = pnand %p687_p0, %p673_p1  ;;  %p695_p4 = scmp.lt.s32.totalorder %s693_s24, %s686_s17 }
  0x27   : > { %p690_p12 = pneg %p689_p2  ;;  %p696_p5 = por %p695_p4, %p694_p11 }
  0x29   : > { %p697_p7 = pnand %p696_p5, %p690_p12 }
  0x2b   : > { %700 = shalt.err (!%p697_p7)
}
  0x2c   : > { %s770_s25 = smov 256   ;;  %s771_s26 = smov 16  }
  0x2d   : > { %595 = dma.hbm_to_vmem [thread:$0]  (!%p861_p13), %s857_s29, 2048, %s865_s3, %s867_s5, %s770_s25, %s770_s25, %s771_s26  }
  0x2e   : > { %p574_p9 = scmp.ge.s32.totalorder %s767_s14, 1  ;;  %p132_p1 = scmp.lt.s32.totalorder %s767_s14, 3 }
  0x30   : > { %p133_p3 = pnand %p574_p9, %p132_p1 }
  0x31   : > { %s898_s27 = sand.u32 (!%p133_p3), 1, %s759_s12  }
  0x32   : > { %136 = sbr.rel (%p133_p3) target bundleno = 883 (0x373), region = 28  ;;  %s575_s28 = sshll.u32 (!%p133_p3), %s898_s27, 7 }
  0x33   : > { %s139_s30 = scalar_lea.sflag (!%p133_p3), [#allocation4], %s898_s27  ;;  %s904_s6 = scalar_lea.vmem (!%p133_p3), [#allocation3], %s575_s28 }
  0x39   : > { %746 = dma.done.wait (%p837_p6), %s139_s30, 2048  }
  0x3a   : > { %748 = vsyncadd (%p837_p6), %s139_s30, 4294965248  ;;  %v911_v0 = vld [vmem:[%s904_s6 + $0x8] sm:$0xff]  ;;  %v914_v1 = vld [vmem:[%s904_s6 + $0x18] sm:$0xff]  ;;  %vm253_vm0 = vcmask 523264   ;;  %s431_s21 = sld [smem:[#allocation2]]  ;;  %s998_s29 = scalar_lea.vmem [#allocation6], %s575_s28 }
  0x3b   : > { %v917_v2 = vld [vmem:[%s904_s6] sm:$0xff]  ;;  %v181_v3 = vpack.c.bf16 %v914_v1, %v911_v0  ;;  %v922_v4 = vld [vmem:[%s904_s6 + $0x10] sm:$0xff]  ;;  %v925_v5 = vld [vmem:[%s904_s6 + $0x28] sm:$0xff]  ;;  %s587_s3 = sshll.u32 %s815_s0, 11  ;;  %s495_s4 = sshll.u32 %s998_s29, 4  ;;  %s1033_s4 = int_to_ptr.vmem [resolvable:$true] %s495_s4 }
  0x3c   : > { %v928_v6 = vld [vmem:[%s904_s6 + $0x38] sm:$0xff]  ;;  %v180_v7 = vpack.c.bf16 %v922_v4, %v917_v2  ;;  %v935_v9 = vld [vmem:[%s904_s6 + $0x20] sm:$0xff]  ;;  %v938_v10 = vld [vmem:[%s904_s6 + $0x30] sm:$0xff]  ;;  %s1031_s8 = scalar_lea.hbm %s1083_s2, %s587_s3  ;;  %s482_s0 = scalar_lea.sflag [#allocation5], %s898_s27 }
  0x3d   : > { %v183_v8 = vpack.c.bf16 %v928_v6, %v925_v5  ;;  %188 = vmatprep.subr.bf16.mxu0 %v181_v3  ;;  %220 = vmatprep.mubr.bf16.mxu0 %v181_v3  ;;  %v941_v11 = vld [vmem:[%s904_s6 + $0x48] sm:$0xff]  ;;  %v944_v12 = vld [vmem:[%s904_s6 + $0x58] sm:$0xff]  ;;  %v182_v13 = vpack.c.bf16 %v938_v10, %v935_v9  ;;  %v951_v15 = vld [vmem:[%s904_s6 + $0x40] sm:$0xff]  ;;  %s701_s9 = scalar_lea.vmem %s1033_s4, 2048  ;;  %p1090_p11 = scmp.ne.s32.totalorder %s1087_s22, 0 }
  0x3e   : > { %189 = vmatpush1.bf16.xpose.msra.mxu0 %v180_v7  ;;  %358 = vmatprep.subr.bf16.mxu1 %v181_v3  ;;  %v185_v14 = vpack.c.bf16 %v944_v12, %v941_v11  ;;  %v954_v16 = vld [vmem:[%s904_s6 + $0x50] sm:$0xff]  ;;  %v957_v17 = vld [vmem:[%s904_s6 + $0x68] sm:$0xff]  ;;  %v960_v18 = vld [vmem:[%s904_s6 + $0x78] sm:$0xff]  ;;  %p702_p6 = scmp.ne.s32.totalorder %s1033_s4, %s701_s9  ;;  %s773_s10 = smov [#allocation6]  }
  0x3f   : > { %190 = vmatprep.subr.bf16.mxu0 %v183_v8  ;;  %359 = vmatpush1.bf16.msra.mxu1 %v180_v7  ;;  %v184_v19 = vpack.c.bf16 %v954_v16, %v951_v15  ;;  %v187_v20 = vpack.c.bf16 %v960_v18, %v957_v17  ;;  %v967_v21 = vld [vmem:[%s904_s6 + $0x60] sm:$0xff]  ;;  %v970_v22 = vld [vmem:[%s904_s6 + $0x70] sm:$0xff]  ;;  %s705_s15 = sshll.u32 %s773_s10, 4  ;;  %s706_s15 = int_to_ptr.vmem [resolvable:$false] %s705_s15 }
  0x40   : > { %360 = vmatprep.subr.bf16.mxu1 %v183_v8  ;;  %v186_v23 = vpack.c.bf16 %v970_v22, %v967_v21  ;;  %p703_p12 = pnand %p702_p6, %p1090_p11  ;;  %s707_s17 = scalar_lea.vmem %s706_s15, 4096 }
  0x41   : > { %p708_p8 = scmp.lt.s32.totalorder %s1033_s4, %s706_s15  ;;  %p709_p10 = scmp.lt.s32.totalorder %s707_s17, %s701_s9 }
  0x42   : > { %p704_p13 = pneg %p703_p12 }
  0x43   : > { %361 = vmatpush1.bf16.msra.mxu1 %v182_v13  ;;  %p710_p0 = por %p709_p10, %p708_p8 }
  0x44   : > { %362 = vmatprep.subr.bf16.mxu1 %v185_v14 }
  0x45   : > { %p711_p2 = pnand %p710_p0, %p704_p13 }
  0x46   : > { %191 = vmatpush1.bf16.xpose.msra.mxu0 %v182_v13 }
  0x47   : > { %192 = vmatprep.subr.bf16.mxu0 %v185_v14  ;;  %363 = vmatpush1.bf16.msra.mxu1 %v184_v19 }
  0x48   : > { %364 = vmatprep.subr.bf16.mxu1 %v187_v20 }
  0x4b   : > { %365 = vmatpush1.bf16.msra.mxu1 %v186_v23 }
  0x4e   : > { %193 = vmatpush1.bf16.xpose.msra.mxu0 %v184_v19 }
  0x4f   : > { %194 = vmatprep.subr.bf16.mxu0 %v187_v20 }
  0x56   : > { %195 = vmatpush1.bf16.xpose.msra.mxu0 %v186_v23 }
  0x5d   : > { %221 = vmatmul.mubr.bf16.vlgmr.msra.gmra.mrb[0].mxu0 %v180_v7 }
  0x5e   : > { %228 = vmatprep.mubr.bf16.mxu0 %v183_v8 }
  0x65   : > { %229 = vmatmul.mubr.bf16.gmra.mrb[4].mxu0 %v182_v13 }
  0x66   : > { %236 = vmatprep.mubr.bf16.mxu0 %v185_v14 }
  0x6d   : > { %237 = vmatmul.mubr.bf16.gmra.mrb[8].mxu0 %v184_v19 }
  0x6e   : > { %244 = vmatprep.mubr.bf16.mxu0 %v187_v20 }
  0x75   : > { %245 = vmatmul.mubr.bf16.gmra.mrb[12].mxu0 %v186_v23 }
 0x130   : > { %v222_v24 = vpop.f32.mrb[0].mxu0 }
 0x131   : > { %v224_v25 = vpop.f32.mrb[1].mxu0  ;;  %v254_v26 = vsel %vm253_vm0, %v222_v24, inf }
 0x132   : > { %255 = vmin.xlane.f32.xlu0 %v254_v26  ;;  %v225_v27 = vpop.f32.mrb[2].mxu0 }
 0x133   : > { %v227_v28 = vpop.f32.mrb[3].mxu0  ;;  %v257_v29 = vsel %vm253_vm0, %v225_v27, inf }
 0x136   : > { %258 = vmin.xlane.f32.xlu0 %v257_v29 }
 0x138   : > { %v230_v30 = vpop.f32.mrb[4].mxu0 }
 0x139   : > { %v232_v31 = vpop.f32.mrb[5].mxu0  ;;  %v260_v32 = vsel %vm253_vm0, %v230_v30, inf }
 0x13a   : > { %261 = vmin.xlane.f32.xlu1 %v260_v32  ;;  %v233_v33 = vpop.f32.mrb[6].mxu0 }
 0x13b   : > { %v235_v34 = vpop.f32.mrb[7].mxu0  ;;  %v263_v35 = vsel %vm253_vm0, %v233_v33, inf }
 0x13e   : > { %264 = vmin.xlane.f32.xlu1 %v263_v35 }
 0x140   : > { %v238_v36 = vpop.f32.mrb[8].mxu0 }
 0x141   : > { %v240_v37 = vpop.f32.mrb[9].mxu0  ;;  %v266_v38 = vsel %vm253_vm0, %v238_v36, inf }
 0x142   : > { %267 = vmin.xlane.f32.xlu0 %v266_v38  ;;  %v241_v39 = vpop.f32.mrb[10].mxu0 }
 0x143   : > { %v243_v40 = vpop.f32.mrb[11].mxu0  ;;  %v269_v41 = vsel %vm253_vm0, %v241_v39, inf }
 0x144   : > { %270 = vmin.xlane.f32.xlu1 %v269_v41  ;;  %v772_v40 = vmov 0  }
 0x145   : > { %390 = vmatprep.mubr.bf16.mxu1 %v772_v40 }
 0x148   : > { %v246_v42 = vpop.f32.mrb[12].mxu0 }
 0x149   : > { %v248_v43 = vpop.f32.mrb[13].mxu0  ;;  %v272_v44 = vsel %vm253_vm0, %v246_v42, inf }
 0x14a   : > { %273 = vmin.xlane.f32.xlu0 %v272_v44  ;;  %v249_v45 = vpop.f32.mrb[14].mxu0 }
 0x14b   : > { %v251_v46 = vpop.f32.mrb[15].mxu0  ;;  %v275_v47 = vsel %vm253_vm0, %v249_v45, inf }
 0x14c   : > { %276 = vmin.xlane.f32.xlu1 %v275_v47 }
 0x1bf   : > { %v256_v48 = vpop.xlane.xlu0 %255 }
 0x1c0   : > { %v278_v49 = vsub.f32 %v256_v48, %v222_v24 }
 0x1c2   : > { %v286_v50 = vmul.f32 1.442695, %v278_v49 }
 0x1c3   : > { %v259_v51 = vpop.xlane.xlu0 %258 }
 0x1c4   : > { %639 = vpow2.f32 %v286_v50  ;;  %v279_v52 = vsub.f32 %v259_v51, %v225_v27 }
 0x1c6   : > { %v288_v53 = vmul.f32 1.442695, %v279_v52 }
 0x1c7   : > { %v262_v54 = vpop.xlane.xlu1 %261 }
 0x1c8   : > { %641 = vpow2.f32 %v288_v53  ;;  %v280_v55 = vsub.f32 %v262_v54, %v230_v30 }
 0x1ca   : > { %v290_v56 = vmul.f32 1.442695, %v280_v55 }
 0x1cb   : > { %v265_v57 = vpop.xlane.xlu1 %264 }
 0x1cc   : > { %643 = vpow2.f32 %v290_v56  ;;  %v281_v58 = vsub.f32 %v265_v57, %v233_v33 }
 0x1ce   : > { %v640_v59 = vpop.eup %639  ;;  %v292_v60 = vmul.f32 1.442695, %v281_v58 }
 0x1cf   : > { %v268_v61 = vpop.xlane.xlu0 %267  ;;  %v302_v62 = vsel %vm253_vm0, %v640_v59, 0.0 }
 0x1d0   : > { %645 = vpow2.f32 %v292_v60  ;;  %v282_v63 = vsub.f32 %v268_v61, %v238_v36  ;;  %303 = vadd.xlane.f32.xlu0 %v302_v62 }
 0x1d1   : > { %v271_v3 = vpop.xlane.xlu1 %270 }
 0x1d2   : > { %v642_v7 = vpop.eup %641  ;;  %v294_v8 = vmul.f32 1.442695, %v282_v63  ;;  %v283_v13 = vsub.f32 %v271_v3, %v241_v39 }
 0x1d3   : > { %v305_v14 = vsel %vm253_vm0, %v642_v7, 0.0 }
 0x1d4   : > { %647 = vpow2.f32 %v294_v8  ;;  %v296_v19 = vmul.f32 1.442695, %v283_v13  ;;  %306 = vadd.xlane.f32.xlu1 %v305_v14 }
 0x1d6   : > { %v644_v20 = vpop.eup %643  ;;  %649 = vpow2.f32 %v296_v19  ;;  %v432_v19 = vstv %s431_s21 }
 0x1d7   : > { %v274_v23 = vpop.xlane.xlu0 %273  ;;  %v308_v24 = vsel %vm253_vm0, %v644_v20, 0.0 }
 0x1d8   : > { %v284_v25 = vsub.f32 %v274_v23, %v246_v42  ;;  %309 = vadd.xlane.f32.xlu0 %v308_v24 }
 0x1d9   : > { %v277_v26 = vpop.xlane.xlu1 %276 }
 0x1da   : > { %v646_v27 = vpop.eup %645  ;;  %v298_v28 = vmul.f32 1.442695, %v284_v25  ;;  %v285_v29 = vsub.f32 %v277_v26, %v249_v45 }
 0x1db   : > { %v311_v30 = vsel %vm253_vm0, %v646_v27, 0.0 }
 0x1dc   : > { %651 = vpow2.f32 %v298_v28  ;;  %v300_v31 = vmul.f32 1.442695, %v285_v29  ;;  %312 = vadd.xlane.f32.xlu1 %v311_v30 }
 0x1de   : > { %v648_v32 = vpop.eup %647  ;;  %653 = vpow2.f32 %v300_v31 }
 0x1df   : > { %v314_v33 = vsel %vm253_vm0, %v648_v32, 0.0 }
 0x1e0   : > { %v650_v34 = vpop.eup %649  ;;  %315 = vadd.xlane.f32.xlu0 %v314_v33 }
 0x1e1   : > { %v317_v35 = vsel %vm253_vm0, %v650_v34, 0.0 }
 0x1e2   : > { %318 = vadd.xlane.f32.xlu1 %v317_v35 }
 0x1e6   : > { %v652_v36 = vpop.eup %651 }
 0x1e7   : > { %v320_v37 = vsel %vm253_vm0, %v652_v36, 0.0 }
 0x1e8   : > { %v654_v38 = vpop.eup %653  ;;  %321 = vadd.xlane.f32.xlu0 %v320_v37 }
 0x1e9   : > { %v323_v39 = vsel %vm253_vm0, %v654_v38, 0.0 }
 0x1ea   : > { %324 = vadd.xlane.f32.xlu1 %v323_v39 }
 0x25d   : > { %v304_v41 = vpop.xlane.xlu0 %303 }
 0x25e   : > { %655 = vrcp.f32 %v304_v41 }
 0x261   : > { %v307_v42 = vpop.xlane.xlu1 %306 }
 0x262   : > { %657 = vrcp.f32 %v307_v42 }
 0x265   : > { %v310_v43 = vpop.xlane.xlu0 %309 }
 0x266   : > { %659 = vrcp.f32 %v310_v43 }
 0x268   : > { %v656_v45 = vpop.eup %655 }
 0x269   : > { %v313_v44 = vpop.xlane.xlu1 %312  ;;  %v334_v48 = vmul.f32 %v656_v45, %v640_v59 }
 0x26a   : > { %661 = vrcp.f32 %v313_v44 }
 0x26c   : > { %v658_v46 = vpop.eup %657 }
 0x26d   : > { %v316_v47 = vpop.xlane.xlu0 %315  ;;  %v335_v49 = vmul.f32 %v658_v46, %v642_v7 }
 0x26e   : > { %663 = vrcp.f32 %v316_v47 }
 0x26f   : > { %v319_v50 = vpop.xlane.xlu1 %318  ;;  %v342_v51 = vpack.c.bf16 %v335_v49, %v334_v48 }
 0x270   : > { %665 = vrcp.f32 %v319_v50  ;;  %v660_v52 = vpop.eup %659 }
 0x271   : > { %577 = vmatmul.mubr.msk.bf16.vlgmr.msra.gmra.mrb[0].mxu1 %vm253_vm0, %v342_v51  ;;  %v336_v55 = vmul.f32 %v660_v52, %v644_v20 }
 0x272   : > { %400 = vmatprep.mubr.bf16.mxu1 %v772_v40 }
 0x274   : > { %v662_v53 = vpop.eup %661 }
 0x275   : > { %v322_v54 = vpop.xlane.xlu0 %321  ;;  %v337_v56 = vmul.f32 %v662_v53, %v646_v27 }
 0x276   : > { %667 = vrcp.f32 %v322_v54 }
 0x277   : > { %v325_v57 = vpop.xlane.xlu1 %324  ;;  %v343_v58 = vpack.c.bf16 %v337_v56, %v336_v55 }
 0x278   : > { %669 = vrcp.f32 %v325_v57  ;;  %v664_v60 = vpop.eup %663 }
 0x279   : > { %578 = vmatmul.mubr.msk.bf16.gmra.mrb[4].mxu1 %vm253_vm0, %v343_v58  ;;  %v338_v62 = vmul.f32 %v664_v60, %v648_v32 }
 0x27a   : > { %v666_v59 = vpop.eup %665  ;;  %410 = vmatprep.mubr.bf16.mxu1 %v772_v40 }
 0x27b   : > { %v339_v61 = vmul.f32 %v666_v59, %v650_v34 }
 0x27d   : > { %v344_v63 = vpack.c.bf16 %v339_v61, %v338_v62 }
 0x280   : > { %v668_v3 = vpop.eup %667 }
 0x281   : > { %579 = vmatmul.mubr.msk.bf16.gmra.mrb[8].mxu1 %vm253_vm0, %v344_v63  ;;  %v340_v13 = vmul.f32 %v668_v3, %v652_v36 }
 0x282   : > { %v670_v7 = vpop.eup %669  ;;  %420 = vmatprep.mubr.bf16.mxu1 %v772_v40 }
 0x283   : > { %v341_v8 = vmul.f32 %v670_v7, %v654_v38 }
 0x285   : > { %v345_v14 = vpack.c.bf16 %v341_v8, %v340_v13 }
 0x289   : > { %580 = vmatmul.mubr.msk.bf16.gmra.mrb[12].mxu1 %vm253_vm0, %v345_v14 }
 0x344   : > { %v392_v20 = vpop.f32.mrb[0].mxu1 }
 0x345   : > { %v433_v23 = vmul.f32 %v432_v19, %v392_v20  ;;  %v394_v24 = vpop.f32.mrb[1].mxu1 }
 0x346   : > { %v434_v25 = vmul.f32 %v432_v19, %v394_v24  ;;  %v396_v26 = vpop.f32.mrb[2].mxu1 }
 0x347   : > { %v449_v27 = vadd.f32 %v433_v23, %v917_v2  ;;  %v435_v28 = vmul.f32 %v432_v19, %v396_v26  ;;  %v398_v29 = vpop.f32.mrb[3].mxu1 }
 0x348   : > { %v450_v30 = vadd.f32 %v434_v25, %v911_v0  ;;  %v436_v31 = vmul.f32 %v432_v19, %v398_v29 }
 0x349   : > { %465 = vst [vmem:[%s998_s29] sm:$0xff] %v449_v27  ;;  %v451_v32 = vadd.f32 %v435_v28, %v922_v4 }
 0x34a   : > { %466 = vst [vmem:[%s998_s29 + $0x8] sm:$0xff] %v450_v30  ;;  %v452_v2 = vadd.f32 %v436_v31, %v914_v1 }
 0x34b   : > { %467 = vst [vmem:[%s998_s29 + $0x10] sm:$0xff] %v451_v32 }
 0x34c   : > { %468 = vst [vmem:[%s998_s29 + $0x18] sm:$0xff] %v452_v2  ;;  %v402_v0 = vpop.f32.mrb[4].mxu1 }
 0x34d   : > { %v437_v33 = vmul.f32 %v432_v19, %v402_v0  ;;  %v404_v34 = vpop.f32.mrb[5].mxu1 }
 0x34e   : > { %v438_v35 = vmul.f32 %v432_v19, %v404_v34  ;;  %v406_v36 = vpop.f32.mrb[6].mxu1 }
 0x34f   : > { %v453_v37 = vadd.f32 %v437_v33, %v935_v9  ;;  %v439_v38 = vmul.f32 %v432_v19, %v406_v36  ;;  %v408_v39 = vpop.f32.mrb[7].mxu1 }
 0x350   : > { %v454_v40 = vadd.f32 %v438_v35, %v925_v5  ;;  %v440_v4 = vmul.f32 %v432_v19, %v408_v39 }
 0x351   : > { %469 = vst [vmem:[%s998_s29 + $0x20] sm:$0xff] %v453_v37  ;;  %v455_v1 = vadd.f32 %v439_v38, %v938_v10 }
 0x352   : > { %470 = vst [vmem:[%s998_s29 + $0x28] sm:$0xff] %v454_v40  ;;  %v456_v41 = vadd.f32 %v440_v4, %v928_v6 }
 0x353   : > { %471 = vst [vmem:[%s998_s29 + $0x30] sm:$0xff] %v455_v1 }
 0x354   : > { %472 = vst [vmem:[%s998_s29 + $0x38] sm:$0xff] %v456_v41  ;;  %v412_v42 = vpop.f32.mrb[8].mxu1 }
 0x355   : > { %v441_v43 = vmul.f32 %v432_v19, %v412_v42  ;;  %v414_v9 = vpop.f32.mrb[9].mxu1 }
 0x356   : > { %v442_v44 = vmul.f32 %v432_v19, %v414_v9  ;;  %v416_v45 = vpop.f32.mrb[10].mxu1 }
 0x357   : > { %v457_v5 = vadd.f32 %v441_v43, %v951_v15  ;;  %v443_v46 = vmul.f32 %v432_v19, %v416_v45  ;;  %v418_v47 = vpop.f32.mrb[11].mxu1 }
 0x358   : > { %v458_v10 = vadd.f32 %v442_v44, %v941_v11  ;;  %v444_v48 = vmul.f32 %v432_v19, %v418_v47 }
 0x359   : > { %473 = vst [vmem:[%s998_s29 + $0x40] sm:$0xff] %v457_v5  ;;  %v459_v6 = vadd.f32 %v443_v46, %v954_v16 }
 0x35a   : > { %474 = vst [vmem:[%s998_s29 + $0x48] sm:$0xff] %v458_v10  ;;  %v460_v49 = vadd.f32 %v444_v48, %v944_v12 }
 0x35b   : > { %475 = vst [vmem:[%s998_s29 + $0x50] sm:$0xff] %v459_v6 }
 0x35c   : > { %476 = vst [vmem:[%s998_s29 + $0x58] sm:$0xff] %v460_v49  ;;  %v422_v50 = vpop.f32.mrb[12].mxu1 }
 0x35d   : > { %v445_v51 = vmul.f32 %v432_v19, %v422_v50  ;;  %v424_v15 = vpop.f32.mrb[13].mxu1 }
 0x35e   : > { %v446_v52 = vmul.f32 %v432_v19, %v424_v15  ;;  %v426_v53 = vpop.f32.mrb[14].mxu1 }
 0x35f   : > { %v461_v11 = vadd.f32 %v445_v51, %v967_v21  ;;  %v447_v16 = vmul.f32 %v432_v19, %v426_v53  ;;  %v428_v54 = vpop.f32.mrb[15].mxu1 }
 0x360   : > { %v462_v12 = vadd.f32 %v446_v52, %v957_v17  ;;  %v448_v55 = vmul.f32 %v432_v19, %v428_v54 }
 0x361   : > { %477 = vst [vmem:[%s998_s29 + $0x60] sm:$0xff] %v461_v11  ;;  %v463_v56 = vadd.f32 %v447_v16, %v970_v22 }
 0x362   : > { %478 = vst [vmem:[%s998_s29 + $0x68] sm:$0xff] %v462_v12  ;;  %v464_v21 = vadd.f32 %v448_v55, %v960_v18 }
 0x363   : > { %479 = vst [vmem:[%s998_s29 + $0x70] sm:$0xff] %v463_v56 }
 0x364   : > { %480 = vst [vmem:[%s998_s29 + $0x78] sm:$0xff] %v464_v21 }
 0x365   : > { %714 = shalt.err (!%p711_p2)
}
 0x366   : > { %s715_s18 = scalar_lea.hbm %s1031_s8, 2048  ;;  %s719_s25 = scalar_lea.hbm %s1083_s2, 4096 }
 0x367   : > { %p716_p4 = scmp.ne.s32.totalorder %s1031_s8, %s715_s18  ;;  %p720_p9 = scmp.lt.u32.totalorder %s1031_s8, %s1083_s2 }
 0x368   : > { %p721_p1 = scmp.lt.u32.totalorder %s719_s25, %s715_s18  ;;  %p723_p6 = scmp.lt.u32.totalorder %s715_s18, %s1031_s8 }
 0x369   : > { %p717_p5 = pnand %p716_p4, %p1090_p11 }
 0x36a   : > { %p722_p3 = por %p721_p1, %p720_p9 }
 0x36b   : > { %p718_p7 = pneg %p717_p5 }
 0x36c   : > { %p724_p12 = por %p723_p6, %p722_p3 }
 0x36e   : > { %p725_p13 = pnand %p724_p12, %p718_p7 }
 0x370   : > { %728 = shalt.err (!%p725_p13)
}
 0x371   : > { %s774_s30 = smov 256   ;;  %s775_s6 = smov 16  }
 0x372   : > { %590 = dma.vmem_to_hbm [thread:$0]  (%p1090_p11), %s1033_s4, 2048, %s1031_s8, %s482_s0, %s774_s30, %s774_s30, %s775_s6  }
 0x373 PF: > { %s510_s21 = sand.u32 1, %s755_s11   ;;  %p1091_p8 = scmp.ne.s32.totalorder %s1088_s23, 0 }
 0x374   : > { %p1092_p10 = scmp.ge.s32.totalorder %s767_s14, 2  ;;  %s511_s29 = scalar_lea.sflag [#allocation5], %s510_s21 }
 0x376   : > { %p597_p0 = pnand %p1092_p10, %p1091_p8 }
 0x378   : > { %750 = dma.done.wait (!%p597_p0), %s511_s29, 2048  }
 0x379   : > { %752 = vsyncadd (!%p597_p0), %s511_s29, 4294965248  ;;  %p16_p2 = scmp.ge.s32.totalorder %s819_s16, 4   ;;  %s1093_s11 = smov %s759_s12 }
 0x37a   : > { %s1094_s12 = smov %s763_s13  ;;  %s1095_s13 = smov %s831_s19 }
 0x37b   : > { %s1096_s14 = smov %s819_s16  ;;  %18 = sbr.rel (!%p16_p2) target bundleno = 7 (0x7), region = 73 }
 0x382   :  { %516 = vsyncpa [#allocation4], 1 }
 0x383   :  { %518 = vsyncpa [#allocation4 + $0x1], 1 }
 0x384   :  { %519 = vsyncpa [#allocation5], 1 }
 0x385   :  { %521 = vsyncpa [#allocation5 + $0x1], 1 }

</bundles_post_ra>
